<compile_context>
chip_gen: v5e
topology: v5e:2x2
jax: 0.10.0
libtpu: 0.0.40
codegen_flags: <defaults>
</compile_context>

<pallas_src>
import jax
import jax.numpy as jnp
from jax.experimental import pallas as pl
from jax.experimental.pallas import tpu as pltpu

INPUT_SIZE = 11   # len(input_cols)
OUTPUT_SIZE = 1   # len(output_cols)


def _round_up(n, m):
    return ((n + m - 1) // m) * m


def _linear_kernel(x_ref, w_ref, b_ref, o_ref):
    # x_ref: VMEM [R, F]   input tile in its native layout / dtype
    # w_ref: VMEM [1, F]   f32 weight row (resident across all grid steps)
    # b_ref: SMEM [1]      f32 bias scalar
    # o_ref: VMEM [R, 1]   f32 output tile
    x = x_ref[...].astype(jnp.float32)                    # cast after the (narrow) DMA
    w = w_ref[...]                                        # (1, F), sublane-broadcast
    acc = jnp.sum(x * w, axis=-1, keepdims=True) + b_ref[0]   # VPU mul + XLU reduce
    o_ref[...] = acc.astype(o_ref.dtype)


def wine_model_forward(x, weight, bias, *, max_rows_block=8192, min_pallas_batch=16384):
    """nn.Linear semantics: returns x @ weight.T + bias with shape [B, OUTPUT_SIZE].

    x:      [B, INPUT_SIZE]  (f32 or bf16; accumulation is f32)
    weight: [OUTPUT_SIZE, INPUT_SIZE]
    bias:   [OUTPUT_SIZE]
    """
    B, F = x.shape
    assert F == INPUT_SIZE
    assert weight.shape[0] == OUTPUT_SIZE

    w_row = weight.reshape(1, F).astype(jnp.float32)      # [1, F]
    b = bias.reshape(OUTPUT_SIZE).astype(jnp.float32)     # [1]

    if B < min_pallas_batch:
        # ~11 FLOPs/row: a custom kernel is pure launch overhead here; XLA's
        # fused matmul is already HBM-bound.
        return x.astype(jnp.float32) @ w_row.T + b

    # Tile size: multiple of 128 rows, >= 2 tiles when B allows (v7x megacore),
    # capped so double-buffered VMEM stays well under the 32 MiB scoped default.
    max_rb = max(128, (max_rows_block // 128) * 128)
    rows_block = min(max_rb, _round_up(-(-B // 2), 128))
    n_blocks = pl.cdiv(B, rows_block)                     # ragged tail is masked by Pallas

    out = pl.pallas_call(
        _linear_kernel,
        out_shape=jax.ShapeDtypeStruct((B, OUTPUT_SIZE), jnp.float32),
        grid=(n_blocks,),
        in_specs=[
            pl.BlockSpec((rows_block, F), lambda i: (i, 0)),      # x tile (native layout)
            pl.BlockSpec((1, F), lambda i: (0, 0)),               # weight row, loaded once
            pl.BlockSpec(memory_space=pltpu.MemorySpace.SMEM),    # bias scalar
        ],
        out_specs=pl.BlockSpec((rows_block, OUTPUT_SIZE), lambda i: (i, 0)),
        compiler_params=pltpu.CompilerParams(
            dimension_semantics=("parallel",),   # independent batch tiles (both TCs on v7x)
        ),
    )(x, w_row, b)
    return out


if __name__ == "__main__":
    key = jax.random.PRNGKey(0)
    kx, kw, kb, kx2 = jax.random.split(key, 4)

    # Deterministic parameter init mimicking PyTorch nn.Linear default:
    # uniform(-1/sqrt(fan_in), +1/sqrt(fan_in)).
    bound = float(INPUT_SIZE) ** -0.5
    weight = jax.random.uniform(
        kw, (OUTPUT_SIZE, INPUT_SIZE), dtype=jnp.float32, minval=-bound, maxval=bound
    )
    bias = jax.random.uniform(
        kb, (OUTPUT_SIZE,), dtype=jnp.float32, minval=-bound, maxval=bound
    )

    # --- Pallas path: small shapes, thresholds overridden to force the kernel.
    #     B=1000 with rows_block=512 -> grid of 2 steps with a masked ragged
    #     tail (488 real rows in the last block), exercising the general path. ---
    B = 1000
    x = jax.random.normal(kx, (B, INPUT_SIZE), dtype=jnp.float32)
    out = wine_model_forward(x, weight, bias, max_rows_block=512, min_pallas_batch=128)
    out = jax.block_until_ready(out)
    ref = x @ weight.T + bias
    assert out.shape == (B, OUTPUT_SIZE)
    assert jnp.allclose(out, ref, atol=1e-5, rtol=1e-5)

    # --- Tiny-batch path: dispatches to plain XLA (kernel not worth launching). ---
    B_small = 8
    x_small = jax.random.normal(kx2, (B_small, INPUT_SIZE), dtype=jnp.float32)
    out_small = jax.block_until_ready(wine_model_forward(x_small, weight, bias))
    ref_small = x_small @ weight.T + bias
    assert out_small.shape == (B_small, OUTPUT_SIZE)
    assert jnp.allclose(out_small, ref_small, atol=1e-5, rtol=1e-5)

    print("KERNEL_OK")
</pallas_src>

<mosaic_0001>
module attributes {stable_mosaic.version = 11 : i64} {
  func.func @_linear_kernel(%arg0: i32, %arg1: memref<512x11xf32, #tpu.memory_space<vmem>>, %arg2: memref<1x11xf32, #tpu.memory_space<vmem>>, %arg3: memref<1xf32, #tpu.memory_space<smem>>, %arg4: memref<512x1xf32, #tpu.memory_space<vmem>>) attributes {dimension_semantics = [#tpu.dimension_semantics<parallel>], iteration_bounds = array<i64: 2>, scalar_prefetch = 0 : i64, scratch_operands = 0 : i64, tpu.core_type = #tpu.core_type<tc>, window_params = [{transform_indices = @transform_0, window_bounds = array<i64: 512, 11>}, {pipeline_mode = #tpu.pipeline_mode<synchronous>, transform_indices = @transform_1, window_bounds = array<i64: 1, 11>}, {transform_indices = @transform_2, window_bounds = array<i64: 1>}, {transform_indices = @transform_3, window_bounds = array<i64: 512, 1>}]} {
    %c0 = arith.constant 0 : index
    %c0_0 = arith.constant 0 : index
    %0 = vector.load %arg1[%c0, %c0_0] : memref<512x11xf32, #tpu.memory_space<vmem>>, vector<512x11xf32>
    %c0_1 = arith.constant 0 : index
    %c0_2 = arith.constant 0 : index
    %1 = vector.load %arg2[%c0_1, %c0_2] : memref<1x11xf32, #tpu.memory_space<vmem>>, vector<1x11xf32>
    %2 = vector.broadcast %1 : vector<1x11xf32> to vector<512x11xf32>
    %3 = arith.mulf %0, %2 : vector<512x11xf32>
    %cst = arith.constant dense<0.000000e+00> : vector<512xf32>
    %4 = vector.multi_reduction <add>, %3, %cst [1] : vector<512x11xf32> to vector<512xf32>
    %5 = vector.shape_cast %4 : vector<512xf32> to vector<512x1xf32>
    %c0_3 = arith.constant 0 : index
    %6 = memref.load %arg3[%c0_3] : memref<1xf32, #tpu.memory_space<smem>>
    %7 = vector.broadcast %6 : f32 to vector<512x1xf32>
    %8 = arith.addf %5, %7 : vector<512x1xf32>
    %c0_4 = arith.constant 0 : index
    %c0_5 = arith.constant 0 : index
    %9 = vector.load %arg4[%c0_4, %c0_5] : memref<512x1xf32, #tpu.memory_space<vmem>>, vector<512x1xf32>
    tpu.vector_store %arg4[%c0_4, %c0_5], %8 {strides = array<i32>} : memref<512x1xf32, #tpu.memory_space<vmem>>, vector<512x1xf32>,
    return
  }
  func.func @transform_0(%arg0: i32) -> (i32, i32) {
    %c0_i32 = arith.constant 0 : i32
    %c0_i32_0 = arith.constant 0 : i32
    return %arg0, %c0_i32 : i32, i32
  }
  func.func @transform_1(%arg0: i32) -> (i32, i32) {
    %c0_i32 = arith.constant 0 : i32
    %c0_i32_0 = arith.constant 0 : i32
    %c0_i32_1 = arith.constant 0 : i32
    return %c0_i32, %c0_i32_0 : i32, i32
  }
  func.func @transform_2(%arg0: i32) -> i32 {
    %c0_i32 = arith.constant 0 : i32
    %c0_i32_0 = arith.constant 0 : i32
    return %c0_i32 : i32
  }
  func.func @transform_3(%arg0: i32) -> (i32, i32) {
    %c0_i32 = arith.constant 0 : i32
    %c0_i32_0 = arith.constant 0 : i32
    return %arg0, %c0_i32 : i32, i32
  }
}

</mosaic_0001>

<bundles_post_ra>
// kernel: tpu_custom_call.1
= control target key start
LH: loop header
LB: loop body
LE: loop exit
PB: predicated region body
PF: predicated region fallthrough
CT: control target
= control target key end

     0   :  { %s1791_s0 = inlined_call_operand.vmem [shape: f32[1000,11], index: 0, kind: input, shape index: {}]   ;;  %s1792_s1 = inlined_call_operand.vmem [shape: f32[1,11], index: 1, kind: input, shape index: {}]   ;;  %s1793_s2 = inlined_call_operand.<no memory space> [shape: f32[1], index: 2, kind: input, shape index: {}]   ;;  %s1794_s3 = inlined_call_operand.vmem [shape: f32[1000,1], index: 3, kind: output, shape index: {}]  }
   0x1   :  { %8 = sst [smem:[#allocation2]] %s1793_s2 }
   0x2   :  { %s1216_s14 = smov 0   ;;  %s1218_s15 = smov 0  }
   0x3   :  { %s1220_s16 = smov 0  }
   0x4 LB: > { %s1229_s2 = sadd.s32 4294967295, %s1159_s16   ;;  %s1231_s17 = sadd.s32 1, %s1159_s16   ;;  %s1159_s16 = sphi %s1220_s16, %s1803_s16   ;;  %s1155_s15 = sphi %s1218_s15, %s1802_s15   ;;  %s1151_s14 = sphi %s1216_s14, %s1801_s14  }
   0x5   : > { %s86_s18 = ssub.s32 %s1159_s16, %s1231_s17  ;;  %s89_s19 = sadd.s32 1, %s1155_s15 }
   0x6   : > { %p87_p0 = scmp.eq.s32.totalorder %s86_s18, 0  ;;  %p99_p1 = scmp.ne.s32.totalorder %s1155_s15, %s1151_s14 }
   0x7   : > { %p100_p2 = scmp.eq.s32.totalorder %s1229_s2, 1  ;;  %p992_p3 = scmp.ge.s32.totalorder %s1159_s16, 1 }
   0x8   : > { %s1239_s20 = scalar_select %p87_p0, %s1155_s15, %s89_s19  }
   0x9   : > { %p1241_p4 = por %p100_p2, %p99_p1  ;;  %p147_p5 = scmp.lt.s32.totalorder %s1159_s16, 3 }
   0xb   : > { %p148_p6 = pnand %p992_p3, %p147_p5 }
   0xc   : > { %s1246_s22 = sshll.u32 (!%p148_p6), %s1229_s2, 6  ;;  %s518_s30 = sld [smem:[#allocation2]] (!%p148_p6) }
   0xd   : > { %151 = sbr.rel (%p148_p6) target bundleno = 377 (0x179), region = 32  ;;  %p179_p7 = scmp.lt.s32.totalorder (!%p148_p6), %s1246_s22, 124 }
   0xe   : > { %s171_s4 = sand.u32 (!%p148_p6), 1, %s1151_s14  }
   0xf   : > { %s993_s5 = sshll.u32 (!%p148_p6), %s171_s4, 9 }
  0x10   : > { %s1409_s6 = scalar_lea.vmem (!%p148_p6), [#allocation3], %s993_s5  }
  0x12   : > { %s180_s23 = scalar_select %p179_p7, %s1246_s22, 124  ;;  %v1253_v0 = vld [vmem:[%s1792_s1] ss:$0 sm:$0xff]  ;;  %vm325_vm0 = vcmask 89088   ;;  %vm584_vm1 = vcmask 7168  }
  0x13   : > { %s657_s7 = ssub.s32 (%p1241_p4), 125, %s1246_s22  ;;  %s1013_s8 = sshll.u32 (%p1241_p4), %s1229_s2, 9 }
  0x14   : > { %s995_s26 = sshll.u32 %s180_s23, 3  ;;  %p658_p8 = scmp.lt.s32.totalorder (%p1241_p4), %s657_s7, 64 }
  0x15   : > { %s1258_s29 = scalar_lea.vmem %s1791_s0, %s995_s26  ;;  %s1656_s11 = scalar_lea.vmem (%p1241_p4), %s1794_s3, %s1013_s8  }
  0x16   : > { %v193_v1 = vld [vmem:[%s1258_s29] sm:$0xff]  ;;  %v195_v3 = vld [vmem:[%s1258_s29 + $0x10] sm:$0xff]  ;;  %v194_v7 = vld [vmem:[%s1258_s29 + $0x8] sm:$0xff] }
  0x17   : > { %v197_v2 = vld [vmem:[%s1258_s29 + $0x20] sm:$0xff]  ;;  %v261_v4 = vmul.f32 %v1253_v0, %v193_v1  ;;  %v263_v6 = vmul.f32 %v1253_v0, %v195_v3  ;;  %v198_v8 = vld [vmem:[%s1258_s29 + $0x28] sm:$0xff]  ;;  %v196_v12 = vld [vmem:[%s1258_s29 + $0x18] sm:$0xff]  ;;  %v262_v13 = vmul.f32 %v1253_v0, %v194_v7 }
  0x18   : > { %v265_v5 = vmul.f32 %v1253_v0, %v197_v2  ;;  %v266_v14 = vmul.f32 %v1253_v0, %v198_v8  ;;  %v264_v15 = vmul.f32 %v1253_v0, %v196_v12  ;;  %v199_v19 = vld [vmem:[%s1258_s29 + $0x30] sm:$0xff]  ;;  %v201_v20 = vld [vmem:[%s1258_s29 + $0x40] sm:$0xff]  ;;  %v200_v21 = vld [vmem:[%s1258_s29 + $0x38] sm:$0xff] }
  0x19   : > { %v326_v9 = vsel %vm325_vm0, %v261_v4, 0.0  ;;  %v332_v11 = vsel %vm325_vm0, %v263_v6, 0.0  ;;  %v329_v16 = vsel %vm325_vm0, %v262_v13, 0.0  ;;  %v267_v22 = vmul.f32 %v1253_v0, %v199_v19  ;;  %v202_v28 = vld [vmem:[%s1258_s29 + $0x48] sm:$0xff]  ;;  %v204_v29 = vld [vmem:[%s1258_s29 + $0x58] sm:$0xff]  ;;  %v203_v30 = vld [vmem:[%s1258_s29 + $0x50] sm:$0xff] }
  0x1a   : > { %v338_v10 = vsel %vm325_vm0, %v265_v5, 0.0  ;;  %327 = vadd.xlane.f32.xlu0 %v326_v9  ;;  %333 = vadd.xlane.f32.xlu1 %v332_v11  ;;  %v341_v17 = vsel %vm325_vm0, %v266_v14, 0.0  ;;  %v335_v18 = vsel %vm325_vm0, %v264_v15, 0.0  ;;  %v269_v23 = vmul.f32 %v1253_v0, %v201_v20  ;;  %v205_v37 = vld [vmem:[%s1258_s29 + $0x60] sm:$0xff]  ;;  %v207_v38 = vld [vmem:[%s1258_s29 + $0x70] sm:$0xff]  ;;  %v206_v39 = vld [vmem:[%s1258_s29 + $0x68] sm:$0xff] }
  0x1b   : > { %339 = vadd.xlane.f32.xlu2 %v338_v10  ;;  %v268_v24 = vmul.f32 %v1253_v0, %v200_v21  ;;  %v344_v25 = vsel %vm325_vm0, %v267_v22, 0.0  ;;  %v270_v31 = vmul.f32 %v1253_v0, %v202_v28  ;;  %v272_v32 = vmul.f32 %v1253_v0, %v204_v29  ;;  %v208_v46 = vld [vmem:[%s1258_s29 + $0x78] sm:$0xff]  ;;  %v210_v47 = vld [vmem:[%s1258_s29 + $0x88] sm:$0xff]  ;;  %v209_v48 = vld [vmem:[%s1258_s29 + $0x80] sm:$0xff] }
  0x1c   : > { %v350_v26 = vsel %vm325_vm0, %v269_v23, 0.0  ;;  %v271_v33 = vmul.f32 %v1253_v0, %v203_v30  ;;  %v273_v40 = vmul.f32 %v1253_v0, %v205_v37  ;;  %v275_v41 = vmul.f32 %v1253_v0, %v207_v38  ;;  %v211_v55 = vld [vmem:[%s1258_s29 + $0x90] sm:$0xff]  ;;  %v213_v56 = vld [vmem:[%s1258_s29 + $0xa0] sm:$0xff]  ;;  %v212_v57 = vld [vmem:[%s1258_s29 + $0x98] sm:$0xff] }
  0x1d   : > { %v347_v27 = vsel %vm325_vm0, %v268_v24, 0.0  ;;  %v353_v34 = vsel %vm325_vm0, %v270_v31, 0.0  ;;  %v359_v35 = vsel %vm325_vm0, %v272_v32, 0.0  ;;  %v274_v42 = vmul.f32 %v1253_v0, %v206_v39  ;;  %v214_v1 = vld [vmem:[%s1258_s29 + $0xa8] sm:$0xff]  ;;  %v216_v2 = vld [vmem:[%s1258_s29 + $0xb8] sm:$0xff]  ;;  %v215_v3 = vld [vmem:[%s1258_s29 + $0xb0] sm:$0xff] }
  0x1e   : > { %v356_v36 = vsel %vm325_vm0, %v271_v33, 0.0  ;;  %v362_v43 = vsel %vm325_vm0, %v273_v40, 0.0  ;;  %v368_v44 = vsel %vm325_vm0, %v275_v41, 0.0  ;;  %v276_v49 = vmul.f32 %v1253_v0, %v208_v46  ;;  %v217_v10 = vld [vmem:[%s1258_s29 + $0xc0] sm:$0xff]  ;;  %v219_v11 = vld [vmem:[%s1258_s29 + $0xd0] sm:$0xff]  ;;  %v218_v12 = vld [vmem:[%s1258_s29 + $0xc8] sm:$0xff] }
  0x1f   : > { %v365_v45 = vsel %vm325_vm0, %v274_v42, 0.0  ;;  %v278_v50 = vmul.f32 %v1253_v0, %v210_v47  ;;  %v277_v51 = vmul.f32 %v1253_v0, %v209_v48  ;;  %v279_v58 = vmul.f32 %v1253_v0, %v211_v55  ;;  %v220_v19 = vld [vmem:[%s1258_s29 + $0xd8] sm:$0xff]  ;;  %v222_v20 = vld [vmem:[%s1258_s29 + $0xe8] sm:$0xff]  ;;  %v221_v21 = vld [vmem:[%s1258_s29 + $0xe0] sm:$0xff] }
  0x20   : > { %v371_v52 = vsel %vm325_vm0, %v276_v49, 0.0  ;;  %v281_v59 = vmul.f32 %v1253_v0, %v213_v56  ;;  %v280_v60 = vmul.f32 %v1253_v0, %v212_v57  ;;  %v282_v4 = vmul.f32 %v1253_v0, %v214_v1  ;;  %v223_v28 = vld [vmem:[%s1258_s29 + $0xf0] sm:$0xff]  ;;  %v225_v29 = vld [vmem:[%s1258_s29 + $0x100] sm:$0xff]  ;;  %v224_v30 = vld [vmem:[%s1258_s29 + $0xf8] sm:$0xff] }
  0x21   : > { %v377_v53 = vsel %vm325_vm0, %v278_v50, 0.0  ;;  %v374_v54 = vsel %vm325_vm0, %v277_v51, 0.0  ;;  %v380_v61 = vsel %vm325_vm0, %v279_v58, 0.0  ;;  %v284_v5 = vmul.f32 %v1253_v0, %v216_v2  ;;  %v226_v37 = vld [vmem:[%s1258_s29 + $0x108] sm:$0xff]  ;;  %v228_v38 = vld [vmem:[%s1258_s29 + $0x118] sm:$0xff]  ;;  %v227_v39 = vld [vmem:[%s1258_s29 + $0x110] sm:$0xff] }
  0x22   : > { %330 = vadd.xlane.f32.xlu0 %v329_v16  ;;  %336 = vadd.xlane.f32.xlu1 %v335_v18  ;;  %v386_v62 = vsel %vm325_vm0, %v281_v59, 0.0  ;;  %v383_v63 = vsel %vm325_vm0, %v280_v60, 0.0  ;;  %v283_v6 = vmul.f32 %v1253_v0, %v215_v3  ;;  %v389_v7 = vsel %vm325_vm0, %v282_v4, 0.0  ;;  %v229_v46 = vld [vmem:[%s1258_s29 + $0x120] sm:$0xff]  ;;  %v231_v47 = vld [vmem:[%s1258_s29 + $0x130] sm:$0xff]  ;;  %v230_v48 = vld [vmem:[%s1258_s29 + $0x128] sm:$0xff] }
  0x23   : > { %342 = vadd.xlane.f32.xlu2 %v341_v17  ;;  %v395_v8 = vsel %vm325_vm0, %v284_v5, 0.0  ;;  %v285_v13 = vmul.f32 %v1253_v0, %v217_v10  ;;  %v287_v14 = vmul.f32 %v1253_v0, %v219_v11  ;;  %v286_v15 = vmul.f32 %v1253_v0, %v218_v12  ;;  %v232_v55 = vld [vmem:[%s1258_s29 + $0x138] sm:$0xff]  ;;  %v234_v56 = vld [vmem:[%s1258_s29 + $0x148] sm:$0xff]  ;;  %v233_v57 = vld [vmem:[%s1258_s29 + $0x140] sm:$0xff] }
  0x24   : > { %v392_v9 = vsel %vm325_vm0, %v283_v6, 0.0  ;;  %v288_v22 = vmul.f32 %v1253_v0, %v220_v19  ;;  %v290_v23 = vmul.f32 %v1253_v0, %v222_v20  ;;  %v289_v24 = vmul.f32 %v1253_v0, %v221_v21  ;;  %v235_v1 = vld [vmem:[%s1258_s29 + $0x150] sm:$0xff]  ;;  %v237_v2 = vld [vmem:[%s1258_s29 + $0x160] sm:$0xff]  ;;  %v236_v3 = vld [vmem:[%s1258_s29 + $0x158] sm:$0xff] }
  0x25   : > { %v398_v16 = vsel %vm325_vm0, %v285_v13, 0.0  ;;  %v404_v17 = vsel %vm325_vm0, %v287_v14, 0.0  ;;  %v401_v18 = vsel %vm325_vm0, %v286_v15, 0.0  ;;  %v291_v31 = vmul.f32 %v1253_v0, %v223_v28  ;;  %v238_v10 = vld [vmem:[%s1258_s29 + $0x168] sm:$0xff]  ;;  %v240_v11 = vld [vmem:[%s1258_s29 + $0x178] sm:$0xff]  ;;  %v239_v12 = vld [vmem:[%s1258_s29 + $0x170] sm:$0xff] }
  0x26   : > { %v293_v32 = vmul.f32 %v1253_v0, %v225_v29  ;;  %v292_v33 = vmul.f32 %v1253_v0, %v224_v30  ;;  %v294_v40 = vmul.f32 %v1253_v0, %v226_v37  ;;  %v296_v41 = vmul.f32 %v1253_v0, %v228_v38  ;;  %v242_v28 = vld [vmem:[%s1258_s29 + $0x188] sm:$0xff] }
  0x27   : > { %v295_v42 = vmul.f32 %v1253_v0, %v227_v39  ;;  %v297_v49 = vmul.f32 %v1253_v0, %v229_v46  ;;  %v299_v50 = vmul.f32 %v1253_v0, %v231_v47  ;;  %v298_v51 = vmul.f32 %v1253_v0, %v230_v48 }
  0x28   : > { %v300_v58 = vmul.f32 %v1253_v0, %v232_v55  ;;  %v302_v59 = vmul.f32 %v1253_v0, %v234_v56  ;;  %v301_v60 = vmul.f32 %v1253_v0, %v233_v57  ;;  %v303_v4 = vmul.f32 %v1253_v0, %v235_v1  ;;  %v247_v56 = vld [vmem:[%s1258_s29 + $0x1b0] sm:$0xff]  ;;  %v249_v57 = vld [vmem:[%s1258_s29 + $0x1c0] sm:$0xff] }
  0x29   : > { %v305_v5 = vmul.f32 %v1253_v0, %v237_v2  ;;  %v304_v6 = vmul.f32 %v1253_v0, %v236_v3  ;;  %v1399_v13 = vstv %s518_s30  ;;  %v306_v14 = vmul.f32 %v1253_v0, %v238_v10  ;;  %v251_v10 = vld [vmem:[%s1258_s29 + $0x1d0] sm:$0xff] }
  0x2a   : > { %345 = vadd.xlane.f32.xlu0 %v344_v25  ;;  %348 = vadd.xlane.f32.xlu1 %v347_v27  ;;  %v407_v25 = vsel %vm325_vm0, %v288_v22, 0.0  ;;  %v410_v27 = vsel %vm325_vm0, %v289_v24, 0.0  ;;  %v308_v15 = vmul.f32 %v1253_v0, %v240_v11 }
  0x2b   : > { %351 = vadd.xlane.f32.xlu2 %v350_v26  ;;  %v413_v26 = vsel %vm325_vm0, %v290_v23, 0.0  ;;  %v461_v22 = vsel %vm325_vm0, %v306_v14, 0.0  ;;  %v319_v14 = vmul.f32 %v1253_v0, %v251_v10 }
  0x2c   : > { %v467_v24 = vsel %vm325_vm0, %v308_v15, 0.0 }
  0x32   : > { %354 = vadd.xlane.f32.xlu0 %v353_v34  ;;  %357 = vadd.xlane.f32.xlu1 %v356_v36  ;;  %v416_v34 = vsel %vm325_vm0, %v291_v31, 0.0  ;;  %v419_v36 = vsel %vm325_vm0, %v292_v33, 0.0  ;;  %v310_v31 = vmul.f32 %v1253_v0, %v242_v28 }
  0x33   : > { %360 = vadd.xlane.f32.xlu2 %v359_v35  ;;  %v422_v35 = vsel %vm325_vm0, %v293_v32, 0.0 }
  0x3a   : > { %363 = vadd.xlane.f32.xlu0 %v362_v43  ;;  %366 = vadd.xlane.f32.xlu1 %v365_v45  ;;  %v425_v43 = vsel %vm325_vm0, %v294_v40, 0.0  ;;  %v428_v45 = vsel %vm325_vm0, %v295_v42, 0.0  ;;  %v473_v40 = vsel %vm325_vm0, %v310_v31, 0.0  ;;  %v246_v42 = vld [vmem:[%s1258_s29 + $0x1a8] sm:$0xff] }
  0x3b   : > { %369 = vadd.xlane.f32.xlu2 %v368_v44  ;;  %v431_v44 = vsel %vm325_vm0, %v296_v41, 0.0  ;;  %v244_v41 = vld [vmem:[%s1258_s29 + $0x198] sm:$0xff] }
  0x42   : > { %372 = vadd.xlane.f32.xlu0 %v371_v52  ;;  %375 = vadd.xlane.f32.xlu1 %v374_v54  ;;  %v434_v52 = vsel %vm325_vm0, %v297_v49, 0.0  ;;  %v437_v54 = vsel %vm325_vm0, %v298_v51, 0.0 }
  0x43   : > { %378 = vadd.xlane.f32.xlu2 %v377_v53  ;;  %v440_v53 = vsel %vm325_vm0, %v299_v50, 0.0 }
  0x4a   : > { %381 = vadd.xlane.f32.xlu0 %v380_v61  ;;  %384 = vadd.xlane.f32.xlu1 %v383_v63  ;;  %v443_v61 = vsel %vm325_vm0, %v300_v58, 0.0  ;;  %v446_v63 = vsel %vm325_vm0, %v301_v60, 0.0  ;;  %v248_v58 = vld [vmem:[%s1258_s29 + $0x1b8] sm:$0xff]  ;;  %v317_v60 = vmul.f32 %v1253_v0, %v249_v57 }
  0x4b   : > { %387 = vadd.xlane.f32.xlu2 %v386_v62  ;;  %v449_v62 = vsel %vm325_vm0, %v302_v59, 0.0  ;;  %v315_v59 = vmul.f32 %v1253_v0, %v247_v56 }
  0x52   : > { %390 = vadd.xlane.f32.xlu0 %v389_v7  ;;  %393 = vadd.xlane.f32.xlu1 %v392_v9  ;;  %v452_v7 = vsel %vm325_vm0, %v303_v4, 0.0  ;;  %v455_v9 = vsel %vm325_vm0, %v304_v6, 0.0  ;;  %v488_v4 = vsel %vm325_vm0, %v315_v59, 0.0  ;;  %v494_v6 = vsel %vm325_vm0, %v317_v60, 0.0 }
  0x53   : > { %396 = vadd.xlane.f32.xlu2 %v395_v8  ;;  %v458_v8 = vsel %vm325_vm0, %v305_v5, 0.0 }
  0x5a   : > { %399 = vadd.xlane.f32.xlu0 %v398_v16  ;;  %402 = vadd.xlane.f32.xlu1 %v401_v18  ;;  %v307_v16 = vmul.f32 %v1253_v0, %v239_v12 }
  0x5b   : > { %405 = vadd.xlane.f32.xlu2 %v404_v17 }
  0x62   : > { %408 = vadd.xlane.f32.xlu0 %v407_v25  ;;  %411 = vadd.xlane.f32.xlu1 %v410_v27  ;;  %v464_v25 = vsel %vm325_vm0, %v307_v16, 0.0  ;;  %v243_v27 = vld [vmem:[%s1258_s29 + $0x190] sm:$0xff] }
  0x63   : > { %414 = vadd.xlane.f32.xlu2 %v413_v26  ;;  %v241_v26 = vld [vmem:[%s1258_s29 + $0x180] sm:$0xff]  ;;  %v311_v30 = vmul.f32 %v1253_v0, %v243_v27 }
  0x64   : > { %v309_v29 = vmul.f32 %v1253_v0, %v241_v26  ;;  %v254_v26 = vld [vmem:[%s1258_s29 + $0x1e8] sm:$0xff] }
  0x65   : > { %v476_v39 = vsel %vm325_vm0, %v311_v30, 0.0 }
  0x66   : > { %v470_v37 = vsel %vm325_vm0, %v309_v29, 0.0  ;;  %v322_v29 = vmul.f32 %v1253_v0, %v254_v26 }
  0x6a   : > { %417 = vadd.xlane.f32.xlu0 %v416_v34  ;;  %420 = vadd.xlane.f32.xlu1 %v419_v36 }
  0x6b   : > { %423 = vadd.xlane.f32.xlu2 %v422_v35 }
  0x72   : > { %426 = vadd.xlane.f32.xlu0 %v425_v43  ;;  %429 = vadd.xlane.f32.xlu1 %v428_v45  ;;  %v245_v43 = vld [vmem:[%s1258_s29 + $0x1a0] sm:$0xff]  ;;  %v314_v45 = vmul.f32 %v1253_v0, %v246_v42 }
  0x73   : > { %432 = vadd.xlane.f32.xlu2 %v431_v44  ;;  %v312_v44 = vmul.f32 %v1253_v0, %v244_v41  ;;  %v313_v46 = vmul.f32 %v1253_v0, %v245_v43 }
  0x75   : > { %v482_v55 = vsel %vm325_vm0, %v313_v46, 0.0 }
  0x7a   : > { %435 = vadd.xlane.f32.xlu0 %v434_v52  ;;  %438 = vadd.xlane.f32.xlu1 %v437_v54  ;;  %v479_v52 = vsel %vm325_vm0, %v312_v44, 0.0  ;;  %v485_v54 = vsel %vm325_vm0, %v314_v45, 0.0 }
  0x7b   : > { %441 = vadd.xlane.f32.xlu2 %v440_v53 }
  0x82   : > { %444 = vadd.xlane.f32.xlu0 %v443_v61  ;;  %447 = vadd.xlane.f32.xlu1 %v446_v63  ;;  %v316_v61 = vmul.f32 %v1253_v0, %v248_v58 }
  0x83   : > { %450 = vadd.xlane.f32.xlu2 %v449_v62 }
  0x8a   : > { %453 = vadd.xlane.f32.xlu0 %v452_v7  ;;  %456 = vadd.xlane.f32.xlu1 %v455_v9  ;;  %v491_v7 = vsel %vm325_vm0, %v316_v61, 0.0  ;;  %v252_v9 = vld [vmem:[%s1258_s29 + $0x1d8] sm:$0xff] }
  0x8b   : > { %459 = vadd.xlane.f32.xlu2 %v458_v8  ;;  %v250_v8 = vld [vmem:[%s1258_s29 + $0x1c8] sm:$0xff]  ;;  %v320_v12 = vmul.f32 %v1253_v0, %v252_v9 }
  0x8c   : > { %v318_v11 = vmul.f32 %v1253_v0, %v250_v8 }
  0x8d   : > { %v328_v17 = vpop.xlane.xlu0 %327  ;;  %v334_v21 = vpop.xlane.xlu1 %333 }
  0x8e   : > { %v340_v18 = vpop.xlane.xlu2 %339  ;;  %v520_v19 = vadd.f32 %v1399_v13, %v328_v17  ;;  %v522_v23 = vadd.f32 %v1399_v13, %v334_v21 }
  0x8f   : > { %v524_v20 = vadd.f32 %v1399_v13, %v340_v18 }
  0x90   : > { %585 = vst.msk [vmem:[%s1409_s6] sm:$0xff] %vm584_vm1, %v520_v19 }
  0x91   : > { %589 = vst.msk [vmem:[%s1409_s6 + $0x20] sm:$0xff] %vm584_vm1, %v524_v20  ;;  %v497_v20 = vsel %vm325_vm0, %v318_v11, 0.0 }
  0x92   : > { %462 = vadd.xlane.f32.xlu0 %v461_v22  ;;  %587 = vst.msk [vmem:[%s1409_s6 + $0x10] sm:$0xff] %vm584_vm1, %v522_v23  ;;  %465 = vadd.xlane.f32.xlu1 %v464_v25  ;;  %v503_v22 = vsel %vm325_vm0, %v320_v12, 0.0  ;;  %v500_v23 = vsel %vm325_vm0, %v319_v14, 0.0  ;;  %v255_v25 = vld [vmem:[%s1258_s29 + $0x1f0] sm:$0xff] }
  0x93   : > { %468 = vadd.xlane.f32.xlu2 %v467_v24  ;;  %v253_v24 = vld [vmem:[%s1258_s29 + $0x1e0] sm:$0xff]  ;;  %v323_v28 = vmul.f32 %v1253_v0, %v255_v25 }
  0x94   : > { %v321_v27 = vmul.f32 %v1253_v0, %v253_v24 }
  0x95   : > { %v331_v32 = vpop.xlane.xlu0 %330  ;;  %v337_v36 = vpop.xlane.xlu1 %336 }
  0x96   : > { %v343_v33 = vpop.xlane.xlu2 %342  ;;  %v521_v34 = vadd.f32 %v1399_v13, %v331_v32  ;;  %v523_v38 = vadd.f32 %v1399_v13, %v337_v36 }
  0x97   : > { %v525_v35 = vadd.f32 %v1399_v13, %v343_v33 }
  0x98   : > { %586 = vst.msk [vmem:[%s1409_s6 + $0x8] sm:$0xff] %vm584_vm1, %v521_v34 }
  0x99   : > { %590 = vst.msk [vmem:[%s1409_s6 + $0x28] sm:$0xff] %vm584_vm1, %v525_v35  ;;  %v506_v35 = vsel %vm325_vm0, %v321_v27, 0.0 }
  0x9a   : > { %471 = vadd.xlane.f32.xlu0 %v470_v37  ;;  %588 = vst.msk [vmem:[%s1409_s6 + $0x18] sm:$0xff] %vm584_vm1, %v523_v38  ;;  %474 = vadd.xlane.f32.xlu1 %v473_v40  ;;  %v512_v37 = vsel %vm325_vm0, %v323_v28, 0.0  ;;  %v509_v38 = vsel %vm325_vm0, %v322_v29, 0.0 }
  0x9b   : > { %477 = vadd.xlane.f32.xlu2 %v476_v39  ;;  %v256_v39 = vld [vmem:[%s1258_s29 + $0x1f8] sm:$0xff] }
  0x9c   : > { %v324_v40 = vmul.f32 %v1253_v0, %v256_v39 }
  0x9d   : > { %v346_v47 = vpop.xlane.xlu0 %345  ;;  %v349_v51 = vpop.xlane.xlu1 %348 }
  0x9e   : > { %v352_v48 = vpop.xlane.xlu2 %351  ;;  %v526_v49 = vadd.f32 %v1399_v13, %v346_v47  ;;  %v527_v53 = vadd.f32 %v1399_v13, %v349_v51  ;;  %v515_v46 = vsel %vm325_vm0, %v324_v40, 0.0 }
  0x9f   : > { %v528_v50 = vadd.f32 %v1399_v13, %v352_v48 }
  0xa0   : > { %591 = vst.msk [vmem:[%s1409_s6 + $0x30] sm:$0xff] %vm584_vm1, %v526_v49 }
  0xa1   : > { %593 = vst.msk [vmem:[%s1409_s6 + $0x40] sm:$0xff] %vm584_vm1, %v528_v50 }
  0xa2   : > { %480 = vadd.xlane.f32.xlu0 %v479_v52  ;;  %592 = vst.msk [vmem:[%s1409_s6 + $0x38] sm:$0xff] %vm584_vm1, %v527_v53  ;;  %483 = vadd.xlane.f32.xlu1 %v482_v55 }
  0xa3   : > { %486 = vadd.xlane.f32.xlu2 %v485_v54 }
  0xa5   : > { %v355_v62 = vpop.xlane.xlu0 %354  ;;  %v358_v3 = vpop.xlane.xlu1 %357 }
  0xa6   : > { %v361_v63 = vpop.xlane.xlu2 %360  ;;  %v529_v1 = vadd.f32 %v1399_v13, %v355_v62  ;;  %v530_v5 = vadd.f32 %v1399_v13, %v358_v3 }
  0xa7   : > { %v531_v2 = vadd.f32 %v1399_v13, %v361_v63 }
  0xa8   : > { %594 = vst.msk [vmem:[%s1409_s6 + $0x48] sm:$0xff] %vm584_vm1, %v529_v1 }
  0xa9   : > { %596 = vst.msk [vmem:[%s1409_s6 + $0x58] sm:$0xff] %vm584_vm1, %v531_v2 }
  0xaa   : > { %489 = vadd.xlane.f32.xlu0 %v488_v4  ;;  %595 = vst.msk [vmem:[%s1409_s6 + $0x50] sm:$0xff] %vm584_vm1, %v530_v5  ;;  %492 = vadd.xlane.f32.xlu1 %v491_v7 }
  0xab   : > { %495 = vadd.xlane.f32.xlu2 %v494_v6 }
  0xad   : > { %v364_v15 = vpop.xlane.xlu0 %363  ;;  %v367_v19 = vpop.xlane.xlu1 %366 }
  0xae   : > { %v370_v16 = vpop.xlane.xlu2 %369  ;;  %v532_v17 = vadd.f32 %v1399_v13, %v364_v15  ;;  %v533_v21 = vadd.f32 %v1399_v13, %v367_v19 }
  0xaf   : > { %v534_v18 = vadd.f32 %v1399_v13, %v370_v16 }
  0xb0   : > { %597 = vst.msk [vmem:[%s1409_s6 + $0x60] sm:$0xff] %vm584_vm1, %v532_v17 }
  0xb1   : > { %599 = vst.msk [vmem:[%s1409_s6 + $0x70] sm:$0xff] %vm584_vm1, %v534_v18 }
  0xb2   : > { %498 = vadd.xlane.f32.xlu0 %v497_v20  ;;  %598 = vst.msk [vmem:[%s1409_s6 + $0x68] sm:$0xff] %vm584_vm1, %v533_v21  ;;  %501 = vadd.xlane.f32.xlu1 %v500_v23 }
  0xb3   : > { %504 = vadd.xlane.f32.xlu2 %v503_v22 }
  0xb5   : > { %v373_v30 = vpop.xlane.xlu0 %372  ;;  %v376_v34 = vpop.xlane.xlu1 %375 }
  0xb6   : > { %v379_v31 = vpop.xlane.xlu2 %378  ;;  %v535_v32 = vadd.f32 %v1399_v13, %v373_v30  ;;  %v536_v36 = vadd.f32 %v1399_v13, %v376_v34 }
  0xb7   : > { %v537_v33 = vadd.f32 %v1399_v13, %v379_v31 }
  0xb8   : > { %600 = vst.msk [vmem:[%s1409_s6 + $0x78] sm:$0xff] %vm584_vm1, %v535_v32 }
  0xb9   : > { %602 = vst.msk [vmem:[%s1409_s6 + $0x88] sm:$0xff] %vm584_vm1, %v537_v33 }
  0xba   : > { %507 = vadd.xlane.f32.xlu0 %v506_v35  ;;  %601 = vst.msk [vmem:[%s1409_s6 + $0x80] sm:$0xff] %vm584_vm1, %v536_v36  ;;  %510 = vadd.xlane.f32.xlu1 %v509_v38 }
  0xbb   : > { %513 = vadd.xlane.f32.xlu2 %v512_v37 }
  0xbd   : > { %v382_v41 = vpop.xlane.xlu0 %381  ;;  %v385_v45 = vpop.xlane.xlu1 %384 }
  0xbe   : > { %v388_v42 = vpop.xlane.xlu2 %387  ;;  %v538_v43 = vadd.f32 %v1399_v13, %v382_v41  ;;  %v539_v47 = vadd.f32 %v1399_v13, %v385_v45 }
  0xbf   : > { %v540_v44 = vadd.f32 %v1399_v13, %v388_v42 }
  0xc0   : > { %603 = vst.msk [vmem:[%s1409_s6 + $0x90] sm:$0xff] %vm584_vm1, %v538_v43 }
  0xc1   : > { %605 = vst.msk [vmem:[%s1409_s6 + $0xa0] sm:$0xff] %vm584_vm1, %v540_v44 }
  0xc2   : > { %516 = vadd.xlane.f32.xlu0 %v515_v46  ;;  %604 = vst.msk [vmem:[%s1409_s6 + $0x98] sm:$0xff] %vm584_vm1, %v539_v47 }
  0xc5   : > { %v391_v0 = vpop.xlane.xlu0 %390  ;;  %v394_v51 = vpop.xlane.xlu1 %393 }
  0xc6   : > { %v397_v48 = vpop.xlane.xlu2 %396  ;;  %v541_v49 = vadd.f32 %v1399_v13, %v391_v0  ;;  %v542_v52 = vadd.f32 %v1399_v13, %v394_v51 }
  0xc7   : > { %v543_v50 = vadd.f32 %v1399_v13, %v397_v48 }
  0xc8   : > { %606 = vst.msk [vmem:[%s1409_s6 + $0xa8] sm:$0xff] %vm584_vm1, %v541_v49 }
  0xc9   : > { %608 = vst.msk [vmem:[%s1409_s6 + $0xb8] sm:$0xff] %vm584_vm1, %v543_v50 }
  0xca   : > { %607 = vst.msk [vmem:[%s1409_s6 + $0xb0] sm:$0xff] %vm584_vm1, %v542_v52 }
  0xcd   : > { %v400_v53 = vpop.xlane.xlu0 %399  ;;  %v403_v57 = vpop.xlane.xlu1 %402 }
  0xce   : > { %v406_v54 = vpop.xlane.xlu2 %405  ;;  %v544_v55 = vadd.f32 %v1399_v13, %v400_v53  ;;  %v545_v58 = vadd.f32 %v1399_v13, %v403_v57 }
  0xcf   : > { %v546_v56 = vadd.f32 %v1399_v13, %v406_v54 }
  0xd0   : > { %609 = vst.msk [vmem:[%s1409_s6 + $0xc0] sm:$0xff] %vm584_vm1, %v544_v55 }
  0xd1   : > { %611 = vst.msk [vmem:[%s1409_s6 + $0xd0] sm:$0xff] %vm584_vm1, %v546_v56 }
  0xd2   : > { %610 = vst.msk [vmem:[%s1409_s6 + $0xc8] sm:$0xff] %vm584_vm1, %v545_v58 }
  0xd5   : > { %v409_v59 = vpop.xlane.xlu0 %408  ;;  %v412_v63 = vpop.xlane.xlu1 %411 }
  0xd6   : > { %v415_v60 = vpop.xlane.xlu2 %414  ;;  %v547_v61 = vadd.f32 %v1399_v13, %v409_v59  ;;  %v548_v1 = vadd.f32 %v1399_v13, %v412_v63 }
  0xd7   : > { %v549_v62 = vadd.f32 %v1399_v13, %v415_v60 }
  0xd8   : > { %612 = vst.msk [vmem:[%s1409_s6 + $0xd8] sm:$0xff] %vm584_vm1, %v547_v61 }
  0xd9   : > { %614 = vst.msk [vmem:[%s1409_s6 + $0xe8] sm:$0xff] %vm584_vm1, %v549_v62 }
  0xda   : > { %613 = vst.msk [vmem:[%s1409_s6 + $0xe0] sm:$0xff] %vm584_vm1, %v548_v1 }
  0xdd   : > { %v418_v2 = vpop.xlane.xlu0 %417  ;;  %v421_v6 = vpop.xlane.xlu1 %420 }
  0xde   : > { %v424_v3 = vpop.xlane.xlu2 %423  ;;  %v550_v4 = vadd.f32 %v1399_v13, %v418_v2  ;;  %v551_v7 = vadd.f32 %v1399_v13, %v421_v6 }
  0xdf   : > { %v552_v5 = vadd.f32 %v1399_v13, %v424_v3 }
  0xe0   : > { %615 = vst.msk [vmem:[%s1409_s6 + $0xf0] sm:$0xff] %vm584_vm1, %v550_v4 }
  0xe1   : > { %617 = vst.msk [vmem:[%s1409_s6 + $0x100] sm:$0xff] %vm584_vm1, %v552_v5 }
  0xe2   : > { %616 = vst.msk [vmem:[%s1409_s6 + $0xf8] sm:$0xff] %vm584_vm1, %v551_v7 }
  0xe5   : > { %v427_v8 = vpop.xlane.xlu0 %426  ;;  %v430_v12 = vpop.xlane.xlu1 %429 }
  0xe6   : > { %v433_v9 = vpop.xlane.xlu2 %432  ;;  %v553_v10 = vadd.f32 %v1399_v13, %v427_v8  ;;  %v554_v14 = vadd.f32 %v1399_v13, %v430_v12 }
  0xe7   : > { %v555_v11 = vadd.f32 %v1399_v13, %v433_v9 }
  0xe8   : > { %618 = vst.msk [vmem:[%s1409_s6 + $0x108] sm:$0xff] %vm584_vm1, %v553_v10 }
  0xe9   : > { %620 = vst.msk [vmem:[%s1409_s6 + $0x118] sm:$0xff] %vm584_vm1, %v555_v11 }
  0xea   : > { %619 = vst.msk [vmem:[%s1409_s6 + $0x110] sm:$0xff] %vm584_vm1, %v554_v14 }
  0xed   : > { %v436_v15 = vpop.xlane.xlu0 %435  ;;  %v439_v19 = vpop.xlane.xlu1 %438 }
  0xee   : > { %v442_v16 = vpop.xlane.xlu2 %441  ;;  %v556_v17 = vadd.f32 %v1399_v13, %v436_v15  ;;  %v557_v20 = vadd.f32 %v1399_v13, %v439_v19 }
  0xef   : > { %v558_v18 = vadd.f32 %v1399_v13, %v442_v16 }
  0xf0   : > { %621 = vst.msk [vmem:[%s1409_s6 + $0x120] sm:$0xff] %vm584_vm1, %v556_v17 }
  0xf1   : > { %623 = vst.msk [vmem:[%s1409_s6 + $0x130] sm:$0xff] %vm584_vm1, %v558_v18 }
  0xf2   : > { %622 = vst.msk [vmem:[%s1409_s6 + $0x128] sm:$0xff] %vm584_vm1, %v557_v20 }
  0xf5   : > { %v445_v21 = vpop.xlane.xlu0 %444  ;;  %v448_v25 = vpop.xlane.xlu1 %447 }
  0xf6   : > { %v451_v22 = vpop.xlane.xlu2 %450  ;;  %v559_v23 = vadd.f32 %v1399_v13, %v445_v21  ;;  %v560_v26 = vadd.f32 %v1399_v13, %v448_v25 }
  0xf7   : > { %v561_v24 = vadd.f32 %v1399_v13, %v451_v22 }
  0xf8   : > { %624 = vst.msk [vmem:[%s1409_s6 + $0x138] sm:$0xff] %vm584_vm1, %v559_v23 }
  0xf9   : > { %626 = vst.msk [vmem:[%s1409_s6 + $0x148] sm:$0xff] %vm584_vm1, %v561_v24 }
  0xfa   : > { %625 = vst.msk [vmem:[%s1409_s6 + $0x140] sm:$0xff] %vm584_vm1, %v560_v26 }
  0xfd   : > { %v454_v27 = vpop.xlane.xlu0 %453  ;;  %v457_v31 = vpop.xlane.xlu1 %456 }
  0xfe   : > { %v460_v28 = vpop.xlane.xlu2 %459  ;;  %v562_v29 = vadd.f32 %v1399_v13, %v454_v27  ;;  %v563_v32 = vadd.f32 %v1399_v13, %v457_v31 }
  0xff   : > { %v564_v30 = vadd.f32 %v1399_v13, %v460_v28 }
 0x100   : > { %627 = vst.msk [vmem:[%s1409_s6 + $0x150] sm:$0xff] %vm584_vm1, %v562_v29 }
 0x101   : > { %629 = vst.msk [vmem:[%s1409_s6 + $0x160] sm:$0xff] %vm584_vm1, %v564_v30 }
 0x102   : > { %628 = vst.msk [vmem:[%s1409_s6 + $0x158] sm:$0xff] %vm584_vm1, %v563_v32 }
 0x105   : > { %v463_v33 = vpop.xlane.xlu0 %462  ;;  %v466_v37 = vpop.xlane.xlu1 %465 }
 0x106   : > { %v469_v34 = vpop.xlane.xlu2 %468  ;;  %v565_v35 = vadd.f32 %v1399_v13, %v463_v33  ;;  %v566_v38 = vadd.f32 %v1399_v13, %v466_v37 }
 0x107   : > { %v567_v36 = vadd.f32 %v1399_v13, %v469_v34 }
 0x108   : > { %630 = vst.msk [vmem:[%s1409_s6 + $0x168] sm:$0xff] %vm584_vm1, %v565_v35 }
 0x109   : > { %632 = vst.msk [vmem:[%s1409_s6 + $0x178] sm:$0xff] %vm584_vm1, %v567_v36 }
 0x10a   : > { %631 = vst.msk [vmem:[%s1409_s6 + $0x170] sm:$0xff] %vm584_vm1, %v566_v38 }
 0x10d   : > { %v472_v39 = vpop.xlane.xlu0 %471  ;;  %v475_v43 = vpop.xlane.xlu1 %474 }
 0x10e   : > { %v478_v40 = vpop.xlane.xlu2 %477  ;;  %v568_v41 = vadd.f32 %v1399_v13, %v472_v39  ;;  %v569_v44 = vadd.f32 %v1399_v13, %v475_v43 }
 0x10f   : > { %v570_v42 = vadd.f32 %v1399_v13, %v478_v40 }
 0x110   : > { %633 = vst.msk [vmem:[%s1409_s6 + $0x180] sm:$0xff] %vm584_vm1, %v568_v41 }
 0x111   : > { %635 = vst.msk [vmem:[%s1409_s6 + $0x190] sm:$0xff] %vm584_vm1, %v570_v42 }
 0x112   : > { %634 = vst.msk [vmem:[%s1409_s6 + $0x188] sm:$0xff] %vm584_vm1, %v569_v44 }
 0x115   : > { %v481_v45 = vpop.xlane.xlu0 %480  ;;  %v484_v48 = vpop.xlane.xlu1 %483 }
 0x116   : > { %v487_v46 = vpop.xlane.xlu2 %486  ;;  %v571_v47 = vadd.f32 %v1399_v13, %v481_v45  ;;  %v572_v49 = vadd.f32 %v1399_v13, %v484_v48 }
 0x117   : > { %v573_v0 = vadd.f32 %v1399_v13, %v487_v46 }
 0x118   : > { %636 = vst.msk [vmem:[%s1409_s6 + $0x198] sm:$0xff] %vm584_vm1, %v571_v47 }
 0x119   : > { %638 = vst.msk [vmem:[%s1409_s6 + $0x1a8] sm:$0xff] %vm584_vm1, %v573_v0 }
 0x11a   : > { %637 = vst.msk [vmem:[%s1409_s6 + $0x1a0] sm:$0xff] %vm584_vm1, %v572_v49 }
 0x11d   : > { %v490_v50 = vpop.xlane.xlu0 %489  ;;  %v493_v54 = vpop.xlane.xlu1 %492 }
 0x11e   : > { %v496_v51 = vpop.xlane.xlu2 %495  ;;  %v574_v52 = vadd.f32 %v1399_v13, %v490_v50  ;;  %v575_v55 = vadd.f32 %v1399_v13, %v493_v54 }
 0x11f   : > { %v576_v53 = vadd.f32 %v1399_v13, %v496_v51 }
 0x120   : > { %639 = vst.msk [vmem:[%s1409_s6 + $0x1b0] sm:$0xff] %vm584_vm1, %v574_v52 }
 0x121   : > { %641 = vst.msk [vmem:[%s1409_s6 + $0x1c0] sm:$0xff] %vm584_vm1, %v576_v53 }
 0x122   : > { %640 = vst.msk [vmem:[%s1409_s6 + $0x1b8] sm:$0xff] %vm584_vm1, %v575_v55 }
 0x125   : > { %v499_v56 = vpop.xlane.xlu0 %498  ;;  %v502_v60 = vpop.xlane.xlu1 %501 }
 0x126   : > { %v505_v57 = vpop.xlane.xlu2 %504  ;;  %v577_v58 = vadd.f32 %v1399_v13, %v499_v56  ;;  %v578_v61 = vadd.f32 %v1399_v13, %v502_v60 }
 0x127   : > { %v579_v59 = vadd.f32 %v1399_v13, %v505_v57 }
 0x128   : > { %642 = vst.msk [vmem:[%s1409_s6 + $0x1c8] sm:$0xff] %vm584_vm1, %v577_v58 }
 0x129   : > { %644 = vst.msk [vmem:[%s1409_s6 + $0x1d8] sm:$0xff] %vm584_vm1, %v579_v59 }
 0x12a   : > { %643 = vst.msk [vmem:[%s1409_s6 + $0x1d0] sm:$0xff] %vm584_vm1, %v578_v61 }
 0x12d   : > { %v508_v62 = vpop.xlane.xlu0 %507  ;;  %v511_v3 = vpop.xlane.xlu1 %510 }
 0x12e   : > { %v514_v63 = vpop.xlane.xlu2 %513  ;;  %v580_v1 = vadd.f32 %v1399_v13, %v508_v62  ;;  %v581_v4 = vadd.f32 %v1399_v13, %v511_v3 }
 0x12f   : > { %v582_v2 = vadd.f32 %v1399_v13, %v514_v63 }
 0x130   : > { %645 = vst.msk [vmem:[%s1409_s6 + $0x1e0] sm:$0xff] %vm584_vm1, %v580_v1 }
 0x131   : > { %647 = vst.msk [vmem:[%s1409_s6 + $0x1f0] sm:$0xff] %vm584_vm1, %v582_v2 }
 0x132   : > { %646 = vst.msk [vmem:[%s1409_s6 + $0x1e8] sm:$0xff] %vm584_vm1, %v581_v4 }
 0x134   : > { %655 = sbr.rel (!%p1241_p4) target bundleno = 377 (0x179), region = 36 }
 0x135   : > { %v517_v5 = vpop.xlane.xlu0 %516 }
 0x136   : > { %v583_v6 = vadd.f32 %v1399_v13, %v517_v5 }
 0x138   : > { %648 = vst.msk [vmem:[%s1409_s6 + $0x1f8] sm:$0xff] %vm584_vm1, %v583_v6 }
 0x139   : > { %s1805_s7 = smov (!%p658_p8, %s657_s7), 64 }
 0x13a   : > { %s998_s12 = sshll.u32 %s1805_s7, 3 }
 0x13b   : > { %p1001_p9 = scmp.eq.s32.totalorder %s998_s12, 0 }
 0x13c   : > { %s1662_s13 = sshrl.u32 (!%p1001_p9), %s1805_s7, 5 }
 0x13d   : > { %666 = sbr.rel (%p1001_p9) target bundleno = 377 (0x179), region = 40  ;;  %p1002_p10 = scmp.le.s32.totalorder (!%p1001_p9), %s1662_s13, 0 }
 0x142   : > { %945 = sbr.rel (%p1002_p10) target bundleno = 360 (0x168), region = 116  ;;  %s1796_s14 = smov (!%p1002_p10), %s1656_s11 }
 0x143   : > { %s1797_s16 = smov (!%p1002_p10), %s1409_s6  ;;  %s1671_s2 = smov (!%p1002_p10), 0  }
 0x144   : > { %s1673_s18 = smov (!%p1002_p10), 0  }
 0x147 LB: >> { %v791_v13 = vld [vmem:[%s1167_s16] sm:$0xff]  ;;  %v793_v7 = vld [vmem:[%s1167_s16 + $0x8] sm:$0xff]  ;;  %v795_v8 = vld [vmem:[%s1167_s16 + $0x10] sm:$0xff]  ;;  %s855_s19 = sadd.s32 1, %s1171_s2  ;;  %s785_s18 = sadd.s32 1, %s1175_s18   ;;  %s1175_s18 = sphi %s1673_s18, %s785_s18   ;;  %s1171_s2 = sphi %s1671_s2, %s1800_s2   ;;  %s1167_s16 = sphi %s1797_s16, %s1799_s16   ;;  %s1163_s14 = sphi %s1796_s14, %s1798_s14  }
 0x148   : >> { %792 = vst [vmem:[%s1163_s14] sm:$0xff] %v791_v13  ;;  %v797_v9 = vld [vmem:[%s1167_s16 + $0x18] sm:$0xff]  ;;  %p856_p11 = scmp.ge.s32.totalorder %s855_s19, %s1662_s13  ;;  %v799_v10 = vld [vmem:[%s1167_s16 + $0x20] sm:$0xff]  ;;  %v801_v11 = vld [vmem:[%s1167_s16 + $0x28] sm:$0xff]  ;;  %p784_p12 = scmp.ge.s32.totalorder %s785_s18, %s1662_s13 }
 0x149   : >> { %794 = vst [vmem:[%s1163_s14 + $0x8] sm:$0xff] %v793_v7  ;;  %v803_v12 = vld [vmem:[%s1167_s16 + $0x30] sm:$0xff]  ;;  %v805_v14 = vld [vmem:[%s1167_s16 + $0x38] sm:$0xff]  ;;  %v807_v15 = vld [vmem:[%s1167_s16 + $0x40] sm:$0xff] }
 0x14a   : >> { %796 = vst [vmem:[%s1163_s14 + $0x10] sm:$0xff] %v795_v8  ;;  %s1807_s19 = smov (%p856_p11, %s855_s19), 0  ;;  %v809_v16 = vld [vmem:[%s1167_s16 + $0x48] sm:$0xff]  ;;  %v811_v17 = vld [vmem:[%s1167_s16 + $0x50] sm:$0xff]  ;;  %v813_v18 = vld [vmem:[%s1167_s16 + $0x58] sm:$0xff] }
 0x14b   : >> { %798 = vst [vmem:[%s1163_s14 + $0x18] sm:$0xff] %v797_v9  ;;  %s1003_s21 = sshll.u32 %s1807_s19, 8  ;;  %v815_v19 = vld [vmem:[%s1167_s16 + $0x60] sm:$0xff]  ;;  %v817_v20 = vld [vmem:[%s1167_s16 + $0x68] sm:$0xff]  ;;  %v819_v21 = vld [vmem:[%s1167_s16 + $0x70] sm:$0xff]  ;;  %s1800_s2 = smov %s1807_s19 }
 0x14c   : >> { %800 = vst [vmem:[%s1163_s14 + $0x20] sm:$0xff] %v799_v10  ;;  %s1705_s22 = scalar_lea.vmem %s1409_s6, %s1003_s21 [#allocation3]   ;;  %s1708_s23 = scalar_lea.vmem %s1656_s11, %s1003_s21   ;;  %v821_v22 = vld [vmem:[%s1167_s16 + $0x78] sm:$0xff]  ;;  %v823_v23 = vld [vmem:[%s1167_s16 + $0x80] sm:$0xff]  ;;  %v825_v24 = vld [vmem:[%s1167_s16 + $0x88] sm:$0xff] }
 0x14d   : >> { %802 = vst [vmem:[%s1163_s14 + $0x28] sm:$0xff] %v801_v11  ;;  %v827_v25 = vld [vmem:[%s1167_s16 + $0x90] sm:$0xff]  ;;  %v829_v26 = vld [vmem:[%s1167_s16 + $0x98] sm:$0xff]  ;;  %v831_v27 = vld [vmem:[%s1167_s16 + $0xa0] sm:$0xff] }
 0x14e   : >> { %804 = vst [vmem:[%s1163_s14 + $0x30] sm:$0xff] %v803_v12  ;;  %v833_v28 = vld [vmem:[%s1167_s16 + $0xa8] sm:$0xff]  ;;  %v835_v29 = vld [vmem:[%s1167_s16 + $0xb0] sm:$0xff]  ;;  %v837_v30 = vld [vmem:[%s1167_s16 + $0xb8] sm:$0xff] }
 0x14f   : >> { %806 = vst [vmem:[%s1163_s14 + $0x38] sm:$0xff] %v805_v14  ;;  %v839_v31 = vld [vmem:[%s1167_s16 + $0xc0] sm:$0xff]  ;;  %v841_v32 = vld [vmem:[%s1167_s16 + $0xc8] sm:$0xff]  ;;  %v843_v33 = vld [vmem:[%s1167_s16 + $0xd0] sm:$0xff] }
 0x150   : >> { %808 = vst [vmem:[%s1163_s14 + $0x40] sm:$0xff] %v807_v15  ;;  %v845_v34 = vld [vmem:[%s1167_s16 + $0xd8] sm:$0xff]  ;;  %v847_v35 = vld [vmem:[%s1167_s16 + $0xe0] sm:$0xff]  ;;  %v849_v36 = vld [vmem:[%s1167_s16 + $0xe8] sm:$0xff] }
 0x151   : >> { %810 = vst [vmem:[%s1163_s14 + $0x48] sm:$0xff] %v809_v16  ;;  %v851_v37 = vld [vmem:[%s1167_s16 + $0xf0] sm:$0xff]  ;;  %v853_v38 = vld [vmem:[%s1167_s16 + $0xf8] sm:$0xff]  ;;  %s1799_s16 = smov %s1705_s22 }
 0x152   : >> { %812 = vst [vmem:[%s1163_s14 + $0x50] sm:$0xff] %v811_v17 }
 0x153   : >> { %814 = vst [vmem:[%s1163_s14 + $0x58] sm:$0xff] %v813_v18 }
 0x154   : >> { %816 = vst [vmem:[%s1163_s14 + $0x60] sm:$0xff] %v815_v19 }
 0x155   : >> { %818 = vst [vmem:[%s1163_s14 + $0x68] sm:$0xff] %v817_v20 }
 0x156   : >> { %820 = vst [vmem:[%s1163_s14 + $0x70] sm:$0xff] %v819_v21 }
 0x157   : >> { %822 = vst [vmem:[%s1163_s14 + $0x78] sm:$0xff] %v821_v22 }
 0x158   : >> { %824 = vst [vmem:[%s1163_s14 + $0x80] sm:$0xff] %v823_v23 }
 0x159   : >> { %826 = vst [vmem:[%s1163_s14 + $0x88] sm:$0xff] %v825_v24 }
 0x15a   : >> { %828 = vst [vmem:[%s1163_s14 + $0x90] sm:$0xff] %v827_v25 }
 0x15b   : >> { %830 = vst [vmem:[%s1163_s14 + $0x98] sm:$0xff] %v829_v26 }
 0x15c   : >> { %832 = vst [vmem:[%s1163_s14 + $0xa0] sm:$0xff] %v831_v27 }
 0x15d   : >> { %834 = vst [vmem:[%s1163_s14 + $0xa8] sm:$0xff] %v833_v28 }
 0x15e   : >> { %836 = vst [vmem:[%s1163_s14 + $0xb0] sm:$0xff] %v835_v29 }
 0x15f   : >> { %838 = vst [vmem:[%s1163_s14 + $0xb8] sm:$0xff] %v837_v30 }
 0x160   : >> { %840 = vst [vmem:[%s1163_s14 + $0xc0] sm:$0xff] %v839_v31 }
 0x161   : >> { %842 = vst [vmem:[%s1163_s14 + $0xc8] sm:$0xff] %v841_v32 }
 0x162   : >> { %844 = vst [vmem:[%s1163_s14 + $0xd0] sm:$0xff] %v843_v33 }
 0x163   : >> { %846 = vst [vmem:[%s1163_s14 + $0xd8] sm:$0xff] %v845_v34  ;;  %787 = sbr.rel (!%p784_p12) target bundleno = 327 (0x147), region = 122 }
 0x164   : >> { %848 = vst [vmem:[%s1163_s14 + $0xe0] sm:$0xff] %v847_v35 }
 0x165   : >> { %850 = vst [vmem:[%s1163_s14 + $0xe8] sm:$0xff] %v849_v36 }
 0x166   : >> { %852 = vst [vmem:[%s1163_s14 + $0xf0] sm:$0xff] %v851_v37 }
 0x167   : >> { %854 = vst [vmem:[%s1163_s14 + $0xf8] sm:$0xff] %v853_v38  ;;  %s1798_s14 = smov %s1708_s23 }
 0x168 PF: > { %s1773_s24 = sand.u32 31, %s1805_s7   ;;  %s1014_s25 = sshll.u32 %s1662_s13, 8 }
 0x169   : > { %s866_s26 = scalar_lea.vmem %s1409_s6, %s1014_s25 [#allocation3]   ;;  %s868_s27 = scalar_lea.vmem %s1656_s11, %s1014_s25  }
 0x16a   : > { %p1008_p13 = scmp.le.s32.totalorder %s1773_s24, 0 }
 0x16b   : > { %s1177_s28 = smov (!%p1008_p13), %s868_s27   ;;  %s1181_s29 = smov (!%p1008_p13), %s866_s26  }
 0x16c   : > { %959 = sbr.rel (%p1008_p13) target bundleno = 377 (0x179), region = 127  ;;  %s1185_s30 = smov (!%p1008_p13), 0  }
 0x16d   : > { %s1189_s4 = smov (!%p1008_p13), 0  }
 0x171 LB: >> { %v878_v39 = vld [vmem:[%s1183_s29] sm:$0xff]  ;;  %s880_s5 = sadd.s32 1, %s1187_s30  ;;  %s872_s4 = sadd.s32 1, %s1191_s4   ;;  %s1191_s4 = sphi %s1189_s4, %s872_s4   ;;  %s1187_s30 = sphi %s1185_s30, %s1186_s30   ;;  %s1183_s29 = sphi %s1181_s29, %s885_s29   ;;  %s1179_s28 = sphi %s1177_s28, %s886_s28  }
 0x172   : >> { %879 = vst [vmem:[%s1179_s28] sm:$0xff] %v878_v39  ;;  %p881_p0 = scmp.ge.s32.totalorder %s880_s5, %s1773_s24  ;;  %p871_p1 = scmp.ge.s32.totalorder %s872_s4, %s1773_s24 }
 0x174   : >> { %s1809_s5 = smov (%p881_p0, %s880_s5), 0  ;;  %874 = sbr.rel (!%p871_p1) target bundleno = 369 (0x171), region = 133 }
 0x175   : >> { %s1009_s6 = sshll.u32 %s1809_s5, 3  ;;  %s1186_s30 = smov %s1809_s5  }
 0x176   : >> { %s885_s29 = scalar_lea.vmem %s866_s26, %s1009_s6 [#allocation3]   ;;  %s886_s28 = scalar_lea.vmem %s868_s27, %s1009_s6  }
 0x179 PF: > { %p11_p2 = scmp.ge.s32.totalorder %s1231_s17, 4   ;;  %s1801_s14 = smov %s1155_s15 }
 0x17a   : > { %s1802_s15 = smov %s1239_s20  ;;  %s1803_s16 = smov %s1231_s17 }
 0x17b   :  { %13 = sbr.rel (!%p11_p2) target bundleno = 4 (0x4), region = 144 }

</bundles_post_ra>
